<compile_context>
chip_gen: v5e
topology: v5e:2x2
jax: 0.10.0
libtpu: 0.0.40
codegen_flags: <defaults>
</compile_context>

<pallas_src>
import functools

import jax
import jax.numpy as jnp
from jax import lax
from jax.experimental import pallas as pl
from jax.experimental.pallas import tpu as pltpu


def _round_up(x, m):
    return ((x + m - 1) // m) * m


# --------------------------------------------------------------------------
# Phase 1: z = x @ M + b   (folded 1x1 conv + graph conv), plus per-column
# sum / sum-of-squares (f32) for the global BatchNorm statistics.
# --------------------------------------------------------------------------
def _gconv_stats_kernel(x_ref, m_ref, b_ref, z_ref, s_ref, ss_ref):
    z = jnp.dot(x_ref[...], m_ref[...], preferred_element_type=jnp.float32)
    z = z + b_ref[...]                                    # (tile_rows, tn) f32
    z_ref[...] = z.astype(z_ref.dtype)                    # bf16 inter-phase store
    s_ref[...] = jnp.sum(z, axis=0, keepdims=True)[None]        # (1,1,tn)
    ss_ref[...] = jnp.sum(z * z, axis=0, keepdims=True)[None]   # (1,1,tn)


# --------------------------------------------------------------------------
# Phase 2: out = relu(z * scale + shift).  residual=False -> branch is 0.
# --------------------------------------------------------------------------
def _bn_relu_kernel(z_ref, scale_ref, shift_ref, o_ref):
    z = z_ref[...].astype(jnp.float32)
    o_ref[...] = jnp.maximum(z * scale_ref[...] + shift_ref[...],
                             0.0).astype(o_ref.dtype)


def spatial_basic_block(x_nchw, conv_w, conv_b, A, edge, gamma, beta, *,
                        eps=1e-5,
                        mxu_dtype=jnp.bfloat16,     # bf16 MXU operands (f32 acc)
                        z_dtype=None,               # inter-phase z dtype (def: mxu_dtype)
                        out_dtype=jnp.float32,
                        tile_rows_target=256,
                        tile_rows2_target=512,      # bigger tiles for mem-bound phase 2
                        tile_cols_target=512,       # 256-aligned for v6e/v7x MXU
                        channels_last_out=False):
    """x_nchw: (N, Cin, T, V); conv_w: (K*Cout, Cin, 1, 1); A: (>=K, V, V)."""
    if z_dtype is None:
        z_dtype = mxu_dtype
    N, c_in, T, V = x_nchw.shape
    c_out = gamma.shape[0]
    K = conv_w.shape[0] // c_out
    B = N * T
    cols = V * c_out
    k_dim = V * c_in

    # ---- column tiling (lane-dense, VMEM-bounded weight block) ------------
    cols_pad = max(128, _round_up(cols, 128))
    if cols_pad > tile_cols_target:
        tn = tile_cols_target
        cols_pad = _round_up(cols_pad, tn)
    else:
        tn = cols_pad
    num_col_tiles = cols_pad // tn

    # ---- row tiling (sublane packing for sub-32-bit operands) -------------
    isz = jnp.dtype(mxu_dtype).itemsize
    zsz = jnp.dtype(z_dtype).itemsize
    osz = jnp.dtype(out_dtype).itemsize
    row_align = max(8, 32 // min(isz, zsz))
    tile_rows = _round_up(min(B, tile_rows_target), row_align)
    b_pad = _round_up(B, tile_rows)
    num_row_tiles = b_pad // tile_rows
    n_pad_rows = b_pad - B

    # ---- host-side parameter folding (glue, not hot-path) -----------------
    W = conv_w.reshape(K, c_out, c_in).astype(jnp.float32)
    bias = conv_b.reshape(K, c_out).astype(jnp.float32)
    AE = (A[:K] * edge[:K]).astype(jnp.float32)            # (K, V, V)
    M = jnp.einsum('kci,kvw->viwc', W, AE,
                   precision=lax.Precision.HIGHEST).reshape(k_dim, cols)
    bz = jnp.einsum('kc,kvw->wc', bias, AE,
                    precision=lax.Precision.HIGHEST).reshape(cols)
    M = jnp.pad(M, ((0, 0), (0, cols_pad - cols))).astype(mxu_dtype)
    bz_pad = jnp.pad(bz, (0, cols_pad - cols))              # (cols_pad,) f32
    b_in = bz_pad.reshape(1, cols_pad)

    # ---- token layout: row = (n,t), col = (v, cin) -------------------------
    x_rows = jnp.transpose(x_nchw, (0, 2, 3, 1)).reshape(B, k_dim)
    x_rows = jnp.pad(x_rows, ((0, n_pad_rows), (0, 0))).astype(mxu_dtype)

    # ---- explicit VMEM budgets (double-buffered blocks + headroom) --------
    p1 = (tile_rows * k_dim * isz + k_dim * tn * isz + tn * 4
          + tile_rows * tn * (zsz + 4) + 2 * tn * 4)
    vmem1 = int(min(64 * 2**20, max(8 * 2**20, 4 * p1)))

    # ---- phase 1: folded matmul + per-tile stats ---------------------------
    z, tsum, tss = pl.pallas_call(
        _gconv_stats_kernel,
        grid=(num_row_tiles, num_col_tiles),
        in_specs=[
            pl.BlockSpec((tile_rows, k_dim), lambda i, j: (i, 0)),
            pl.BlockSpec((k_dim, tn), lambda i, j: (0, j)),        # weight block
            pl.BlockSpec((1, tn), lambda i, j: (0, j)),            # folded bias
        ],
        out_specs=[
            pl.BlockSpec((tile_rows, tn), lambda i, j: (i, j)),
            pl.BlockSpec((1, 1, tn), lambda i, j: (i, 0, j)),
            pl.BlockSpec((1, 1, tn), lambda i, j: (i, 0, j)),
        ],
        out_shape=[
            jax.ShapeDtypeStruct((b_pad, cols_pad), z_dtype),
            jax.ShapeDtypeStruct((num_row_tiles, 1, cols_pad), jnp.float32),
            jax.ShapeDtypeStruct((num_row_tiles, 1, cols_pad), jnp.float32),
        ],
        compiler_params=pltpu.CompilerParams(
            dimension_semantics=("parallel", "parallel"),
            vmem_limit_bytes=vmem1),
    )(x_rows, M, b_in)

    # ---- finalize global BN statistics (tiny; plain JAX) ------------------
    tot_sum = jnp.sum(tsum, axis=0).reshape(cols_pad)
    tot_ss = jnp.sum(tss, axis=0).reshape(cols_pad)
    if n_pad_rows:  # zero-padded rows contributed exactly the folded bias
        tot_sum = tot_sum - n_pad_rows * bz_pad
        tot_ss = tot_ss - n_pad_rows * bz_pad * bz_pad
    count = B * V                                            # elems per channel
    s_c = tot_sum[:cols].reshape(V, c_out).sum(axis=0)
    ss_c = tot_ss[:cols].reshape(V, c_out).sum(axis=0)
    mean = s_c / count
    var = jnp.maximum(ss_c / count - mean * mean, 0.0)       # biased (train-mode BN)
    scale_c = gamma.astype(jnp.float32) * lax.rsqrt(var + eps)
    shift_c = beta.astype(jnp.float32) - mean * scale_c
    scale_cols = jnp.pad(jnp.tile(scale_c, V),
                         (0, cols_pad - cols)).reshape(1, cols_pad)
    shift_cols = jnp.pad(jnp.tile(shift_c, V),
                         (0, cols_pad - cols)).reshape(1, cols_pad)

    # ---- phase 2 tiling: bigger row blocks (mem-bound elementwise) --------
    m_max = max(1, tile_rows2_target // tile_rows)
    m = 1
    for cand in range(min(m_max, num_row_tiles), 0, -1):
        if num_row_tiles % cand == 0:
            m = cand
            break
    tile_rows2 = tile_rows * m
    p2 = tile_rows2 * tn * (zsz + osz) + 2 * tn * 4
    vmem2 = int(min(64 * 2**20, max(8 * 2**20, 4 * p2)))

    # ---- phase 2: normalize + ReLU -----------------------------------------
    out = pl.pallas_call(
        _bn_relu_kernel,
        grid=(b_pad // tile_rows2, num_col_tiles),
        in_specs=[
            pl.BlockSpec((tile_rows2, tn), lambda i, j: (i, j)),
            pl.BlockSpec((1, tn), lambda i, j: (0, j)),
            pl.BlockSpec((1, tn), lambda i, j: (0, j)),
        ],
        out_specs=pl.BlockSpec((tile_rows2, tn), lambda i, j: (i, j)),
        out_shape=jax.ShapeDtypeStruct((b_pad, cols_pad), out_dtype),
        compiler_params=pltpu.CompilerParams(
            dimension_semantics=("parallel", "parallel"),
            vmem_limit_bytes=vmem2),
    )(z, scale_cols, shift_cols)

    # ---- epilogue: (B, V*Cout) -> (N, T, V, Cout) [-> (N, Cout, T, V)] -----
    out = out[:B, :cols].reshape(N, T, V, c_out)
    if channels_last_out:
        return out            # skips the extra HBM transpose pass
    return jnp.transpose(out, (0, 3, 1, 2))


def ref_forward(x, conv_w, conv_b, A, edge, gamma, beta, eps=1e-5):
    """Pure-JAX reference mirroring the PyTorch forward (train-mode BN)."""
    N, c_in, T, V = x.shape
    kc = conv_w.shape[0]
    c_out = gamma.shape[0]
    K = kc // c_out
    w2 = conv_w.reshape(kc, c_in)
    y = jnp.einsum('nitv,oi->notv', x, w2,
                   precision=lax.Precision.HIGHEST) + conv_b[None, :, None, None]
    y = y.reshape(N, K, c_out, T, V)
    ae = A[:K] * edge[:K]
    z = jnp.einsum('nkctv,kvw->nctw', y, ae, precision=lax.Precision.HIGHEST)
    mean = z.mean(axis=(0, 2, 3), keepdims=True)
    var = ((z - mean) ** 2).mean(axis=(0, 2, 3), keepdims=True)
    zn = (z - mean) / jnp.sqrt(var + eps) * gamma[None, :, None, None] \
        + beta[None, :, None, None]
    return jnp.maximum(zn, 0.0)


if __name__ == "__main__":
    key = jax.random.PRNGKey(0)
    kx, kw, kb, ka, kg, kbt = jax.random.split(key, 6)

    N, c_in, c_out, T, V = 2, 4, 8, 16, 8
    max_graph_distance = 1
    K = max_graph_distance + 1

    x = jax.random.normal(kx, (N, c_in, T, V), jnp.float32)
    conv_w = 0.1 * jax.random.normal(kw, (K * c_out, c_in, 1, 1), jnp.float32)
    conv_b = 0.1 * jax.random.normal(kb, (K * c_out,), jnp.float32)
    A = 0.5 * jax.random.normal(ka, (3, V, V), jnp.float32)  # buffer A (sliced to K)
    edge = jnp.ones((K, V, V), jnp.float32)                  # edge importance init
    gamma = 1.0 + 0.1 * jax.random.normal(kg, (c_out,), jnp.float32)
    beta = 0.1 * jax.random.normal(kbt, (c_out,), jnp.float32)

    ref = ref_forward(x, conv_w, conv_b, A, edge, gamma, beta)

    # f32-operand path: structural correctness at tight-ish tolerance.
    fwd_f32 = jax.jit(functools.partial(spatial_basic_block,
                                        mxu_dtype=jnp.float32))
    out_f32 = jax.block_until_ready(
        fwd_f32(x, conv_w, conv_b, A, edge, gamma, beta))
    assert out_f32.shape == (N, c_out, T, V)
    err_f32 = float(jnp.max(jnp.abs(out_f32 - ref)))
    assert jnp.allclose(out_f32, ref, atol=2e-2, rtol=2e-2), \
        f"f32-path max abs err {err_f32}"

    # Default fast path: bf16 MXU operands + bf16 inter-phase z (f32 acc/BN).
    fwd = jax.jit(spatial_basic_block)
    out = jax.block_until_ready(fwd(x, conv_w, conv_b, A, edge, gamma, beta))
    assert out.shape == (N, c_out, T, V)
    err_bf16 = float(jnp.max(jnp.abs(out - ref)))
    assert err_bf16 < 5e-2, f"bf16-path max abs err {err_bf16}"

    print("KERNEL_OK")
</pallas_src>

<mosaic_0001>
module attributes {stable_mosaic.version = 11 : i64} {
  func.func @_gconv_stats_kernel(%arg0: i32, %arg1: i32, %arg2: memref<32x32xf32, #tpu.memory_space<vmem>>, %arg3: memref<32x128xf32, #tpu.memory_space<vmem>>, %arg4: memref<1x128xf32, #tpu.memory_space<vmem>>, %arg5: memref<32x128xf32, #tpu.memory_space<vmem>>, %arg6: memref<1x1x128xf32, #tpu.memory_space<vmem>>, %arg7: memref<1x1x128xf32, #tpu.memory_space<vmem>>) attributes {dimension_semantics = [#tpu.dimension_semantics<parallel>, #tpu.dimension_semantics<parallel>], iteration_bounds = array<i64: 1, 1>, scalar_prefetch = 0 : i64, scratch_operands = 0 : i64, tpu.core_type = #tpu.core_type<tc>, window_params = [{transform_indices = @transform_0, window_bounds = array<i64: 32, 32>}, {transform_indices = @transform_1, window_bounds = array<i64: 32, 128>}, {transform_indices = @transform_2, window_bounds = array<i64: 1, 128>}, {transform_indices = @transform_3, window_bounds = array<i64: 32, 128>}, {transform_indices = @transform_4, window_bounds = array<i64: 1, 1, 128>}, {transform_indices = @transform_5, window_bounds = array<i64: 1, 1, 128>}]} {
    %c0 = arith.constant 0 : index
    %c0_0 = arith.constant 0 : index
    %0 = vector.load %arg2[%c0, %c0_0] : memref<32x32xf32, #tpu.memory_space<vmem>>, vector<32x32xf32>
    %c0_1 = arith.constant 0 : index
    %c0_2 = arith.constant 0 : index
    %1 = vector.load %arg3[%c0_1, %c0_2] : memref<32x128xf32, #tpu.memory_space<vmem>>, vector<32x128xf32>
    %cst = arith.constant dense<0.000000e+00> : vector<32x128xf32>
    %2 = tpu.matmul %0, %1, %cst {dimension_numbers = #tpu.dot_dimension_numbers<[1], [0], [0], [1], [0, 0, 1, 1], [], []>} : vector<32x32xf32>, vector<32x128xf32>, vector<32x128xf32> -> vector<32x128xf32>
    %c0_3 = arith.constant 0 : index
    %c0_4 = arith.constant 0 : index
    %3 = vector.load %arg4[%c0_3, %c0_4] : memref<1x128xf32, #tpu.memory_space<vmem>>, vector<1x128xf32>
    %4 = vector.broadcast %3 : vector<1x128xf32> to vector<32x128xf32>
    %5 = arith.addf %2, %4 : vector<32x128xf32>
    %c0_5 = arith.constant 0 : index
    %c0_6 = arith.constant 0 : index
    %6 = vector.load %arg5[%c0_5, %c0_6] : memref<32x128xf32, #tpu.memory_space<vmem>>, vector<32x128xf32>
    tpu.vector_store %arg5[%c0_5, %c0_6], %5 {strides = array<i32>} : memref<32x128xf32, #tpu.memory_space<vmem>>, vector<32x128xf32>,
    %cst_7 = arith.constant dense<0.000000e+00> : vector<128xf32>
    %7 = vector.multi_reduction <add>, %5, %cst_7 [0] : vector<32x128xf32> to vector<128xf32>
    %8 = vector.shape_cast %7 : vector<128xf32> to vector<1x128xf32>
    %9 = vector.shape_cast %8 : vector<1x128xf32> to vector<1x1x128xf32>
    %c0_8 = arith.constant 0 : index
    %c0_9 = arith.constant 0 : index
    %c0_10 = arith.constant 0 : index
    %10 = vector.load %arg6[%c0_8, %c0_9, %c0_10] : memref<1x1x128xf32, #tpu.memory_space<vmem>>, vector<1x1x128xf32>
    tpu.vector_store %arg6[%c0_8, %c0_9, %c0_10], %9 {strides = array<i32>} : memref<1x1x128xf32, #tpu.memory_space<vmem>>, vector<1x1x128xf32>,
    %11 = arith.mulf %5, %5 : vector<32x128xf32>
    %cst_11 = arith.constant dense<0.000000e+00> : vector<128xf32>
    %12 = vector.multi_reduction <add>, %11, %cst_11 [0] : vector<32x128xf32> to vector<128xf32>
    %13 = vector.shape_cast %12 : vector<128xf32> to vector<1x128xf32>
    %14 = vector.shape_cast %13 : vector<1x128xf32> to vector<1x1x128xf32>
    %c0_12 = arith.constant 0 : index
    %c0_13 = arith.constant 0 : index
    %c0_14 = arith.constant 0 : index
    %15 = vector.load %arg7[%c0_12, %c0_13, %c0_14] : memref<1x1x128xf32, #tpu.memory_space<vmem>>, vector<1x1x128xf32>
    tpu.vector_store %arg7[%c0_12, %c0_13, %c0_14], %14 {strides = array<i32>} : memref<1x1x128xf32, #tpu.memory_space<vmem>>, vector<1x1x128xf32>,
    return
  }
  func.func @transform_0(%arg0: i32, %arg1: i32) -> (i32, i32) {
    %c0_i32 = arith.constant 0 : i32
    %c0_i32_0 = arith.constant 0 : i32
    return %arg0, %c0_i32 : i32, i32
  }
  func.func @transform_1(%arg0: i32, %arg1: i32) -> (i32, i32) {
    %c0_i32 = arith.constant 0 : i32
    %c0_i32_0 = arith.constant 0 : i32
    return %c0_i32, %arg1 : i32, i32
  }
  func.func @transform_2(%arg0: i32, %arg1: i32) -> (i32, i32) {
    %c0_i32 = arith.constant 0 : i32
    %c0_i32_0 = arith.constant 0 : i32
    return %c0_i32, %arg1 : i32, i32
  }
  func.func @transform_3(%arg0: i32, %arg1: i32) -> (i32, i32) {
    %c0_i32 = arith.constant 0 : i32
    return %arg0, %arg1 : i32, i32
  }
  func.func @transform_4(%arg0: i32, %arg1: i32) -> (i32, i32, i32) {
    %c0_i32 = arith.constant 0 : i32
    %c0_i32_0 = arith.constant 0 : i32
    return %arg0, %c0_i32, %arg1 : i32, i32, i32
  }
  func.func @transform_5(%arg0: i32, %arg1: i32) -> (i32, i32, i32) {
    %c0_i32 = arith.constant 0 : i32
    %c0_i32_0 = arith.constant 0 : i32
    return %arg0, %c0_i32, %arg1 : i32, i32, i32
  }
}

module attributes {stable_mosaic.version = 11 : i64} {
  func.func @_bn_relu_kernel(%arg0: i32, %arg1: i32, %arg2: memref<32x128xf32, #tpu.memory_space<vmem>>, %arg3: memref<1x128xf32, #tpu.memory_space<vmem>>, %arg4: memref<1x128xf32, #tpu.memory_space<vmem>>, %arg5: memref<32x128xf32, #tpu.memory_space<vmem>>) attributes {dimension_semantics = [#tpu.dimension_semantics<parallel>, #tpu.dimension_semantics<parallel>], iteration_bounds = array<i64: 1, 1>, scalar_prefetch = 0 : i64, scratch_operands = 0 : i64, tpu.core_type = #tpu.core_type<tc>, window_params = [{transform_indices = @transform_0, window_bounds = array<i64: 32, 128>}, {transform_indices = @transform_1, window_bounds = array<i64: 1, 128>}, {transform_indices = @transform_2, window_bounds = array<i64: 1, 128>}, {transform_indices = @transform_3, window_bounds = array<i64: 32, 128>}]} {
    %c0 = arith.constant 0 : index
    %c0_0 = arith.constant 0 : index
    %0 = vector.load %arg2[%c0, %c0_0] : memref<32x128xf32, #tpu.memory_space<vmem>>, vector<32x128xf32>
    %c0_1 = arith.constant 0 : index
    %c0_2 = arith.constant 0 : index
    %1 = vector.load %arg3[%c0_1, %c0_2] : memref<1x128xf32, #tpu.memory_space<vmem>>, vector<1x128xf32>
    %2 = vector.broadcast %1 : vector<1x128xf32> to vector<32x128xf32>
    %3 = arith.mulf %0, %2 : vector<32x128xf32>
    %c0_3 = arith.constant 0 : index
    %c0_4 = arith.constant 0 : index
    %4 = vector.load %arg4[%c0_3, %c0_4] : memref<1x128xf32, #tpu.memory_space<vmem>>, vector<1x128xf32>
    %5 = vector.broadcast %4 : vector<1x128xf32> to vector<32x128xf32>
    %6 = arith.addf %3, %5 : vector<32x128xf32>
    %cst = arith.constant 0.000000e+00 : f32
    %7 = vector.broadcast %cst : f32 to vector<32x128xf32>
    %8 = arith.maximumf %6, %7 : vector<32x128xf32>
    %c0_5 = arith.constant 0 : index
    %c0_6 = arith.constant 0 : index
    %9 = vector.load %arg5[%c0_5, %c0_6] : memref<32x128xf32, #tpu.memory_space<vmem>>, vector<32x128xf32>
    tpu.vector_store %arg5[%c0_5, %c0_6], %8 {strides = array<i32>} : memref<32x128xf32, #tpu.memory_space<vmem>>, vector<32x128xf32>,
    return
  }
  func.func @transform_0(%arg0: i32, %arg1: i32) -> (i32, i32) {
    %c0_i32 = arith.constant 0 : i32
    return %arg0, %arg1 : i32, i32
  }
  func.func @transform_1(%arg0: i32, %arg1: i32) -> (i32, i32) {
    %c0_i32 = arith.constant 0 : i32
    %c0_i32_0 = arith.constant 0 : i32
    return %c0_i32, %arg1 : i32, i32
  }
  func.func @transform_2(%arg0: i32, %arg1: i32) -> (i32, i32) {
    %c0_i32 = arith.constant 0 : i32
    %c0_i32_0 = arith.constant 0 : i32
    return %c0_i32, %arg1 : i32, i32
  }
  func.func @transform_3(%arg0: i32, %arg1: i32) -> (i32, i32) {
    %c0_i32 = arith.constant 0 : i32
    return %arg0, %arg1 : i32, i32
  }
}

</mosaic_0001>

<bundles_post_ra>
// kernel: tile.18
= control target key start
LH: loop header
LB: loop body
LE: loop exit
PB: predicated region body
PF: predicated region fallthrough
CT: control target
= control target key end

     0   :  { %s22_s0 = inlined_call_operand.vmem [shape: f32[8], index: 0, kind: input, shape index: {}]   ;;  %s23_s1 = inlined_call_operand.vmem [shape: f32[8,8], index: 1, kind: output, shape index: {}]  }
   0x1   :  { %v4_v0 = vld [vmem:[%s22_s0] ss:$0 sm:$0xff] }
   0x2   :  { %5 = vst [vmem:[%s23_s1] sm:$0xff] %v4_v0 }

// kernel: spatial_basic_block.3
= control target key start
LH: loop header
LB: loop body
LE: loop exit
PB: predicated region body
PF: predicated region fallthrough
CT: control target
= control target key end

     0   :  { %s98_s0 = inlined_call_operand.vmem [shape: f32[32,128], index: 0, kind: input, shape index: {}]   ;;  %s99_s1 = inlined_call_operand.vmem [shape: f32[1,128], index: 1, kind: input, shape index: {}]   ;;  %s100_s2 = inlined_call_operand.vmem [shape: f32[1,128], index: 2, kind: input, shape index: {}]   ;;  %s101_s3 = inlined_call_operand.vmem [shape: f32[32,128], index: 3, kind: output, shape index: {}]  }
   0x1   :  { %v14_v0 = vld [vmem:[%s98_s0] sm:$0xff]  ;;  %v15_v3 = vld [vmem:[%s98_s0 + $0x8] sm:$0xff]  ;;  %v16_v6 = vld [vmem:[%s98_s0 + $0x10] sm:$0xff] }
   0x2   :  { %v46_v1 = vld [vmem:[%s99_s1] ss:$0 sm:$0xff]  ;;  %v17_v7 = vld [vmem:[%s98_s0 + $0x18] sm:$0xff] }
   0x3   :  { %v47_v2 = vld [vmem:[%s100_s2] ss:$0 sm:$0xff]  ;;  %v22_v4 = vmul.f32 %v46_v1, %v14_v0  ;;  %v23_v5 = vmul.f32 %v46_v1, %v15_v3  ;;  %v24_v8 = vmul.f32 %v46_v1, %v16_v6  ;;  %v25_v9 = vmul.f32 %v46_v1, %v17_v7 }
   0x5   :  { %v30_v10 = vadd.f32 %v47_v2, %v22_v4  ;;  %v31_v11 = vadd.f32 %v47_v2, %v23_v5  ;;  %v32_v12 = vadd.f32 %v47_v2, %v24_v8  ;;  %v33_v13 = vadd.f32 %v47_v2, %v25_v9 }
   0x7   :  { %v34_v14 = vmax.f32 %v30_v10, 0.0  ;;  %v35_v15 = vmax.f32 %v31_v11, 0.0  ;;  %v36_v16 = vmax.f32 %v32_v12, 0.0  ;;  %v37_v17 = vmax.f32 %v33_v13, 0.0 }
   0x9   :  { %38 = vst [vmem:[%s101_s3] sm:$0xff] %v34_v14 }
   0xa   :  { %39 = vst [vmem:[%s101_s3 + $0x8] sm:$0xff] %v35_v15 }
   0xb   :  { %40 = vst [vmem:[%s101_s3 + $0x10] sm:$0xff] %v36_v16 }
   0xc   :  { %41 = vst [vmem:[%s101_s3 + $0x18] sm:$0xff] %v37_v17 }

// kernel: spatial_basic_block.2
= control target key start
LH: loop header
LB: loop body
LE: loop exit
PB: predicated region body
PF: predicated region fallthrough
CT: control target
= control target key end

     0   :  { %vm29_vm0 = vcmask 261120   ;;  %s203_s1 = inlined_call_operand.vmem [shape: f32[32,128], index: 1, kind: input, shape index: {}]   ;;  %s204_s2 = inlined_call_operand.vmem [shape: f32[1,128], index: 2, kind: input, shape index: {}]   ;;  %s205_s0 = inlined_call_operand.vmem [shape: f32[32,32], index: 0, kind: input, shape index: {}]   ;;  %s206_s3 = inlined_call_operand.vmem [shape: f32[32,128], index: 3, kind: output, shape index: {0}]   ;;  %s207_s4 = inlined_call_operand.vmem [shape: f32[1,1,128], index: 4, kind: output, shape index: {1}]   ;;  %s208_s5 = inlined_call_operand.vmem [shape: f32[1,1,128], index: 5, kind: output, shape index: {2}]  }
   0x1   :  { %v24_v0 = vld [vmem:[%s203_s1 + $0x18] sm:$0xff]  ;;  %v23_v1 = vld [vmem:[%s203_s1 + $0x10] sm:$0xff]  ;;  %v22_v2 = vld [vmem:[%s203_s1 + $0x8] sm:$0xff] }
   0x2   :  { %116 = vmatpush.msra.mxu2 %v24_v0  ;;  %117 = vmatpush.msra.mxu3 %v24_v0  ;;  %v21_v3 = vld [vmem:[%s203_s1] sm:$0xff]  ;;  %v19_v4 = vld [vmem:[%s205_s0 + $0x10] sm:$0xff]  ;;  %v20_v5 = vld [vmem:[%s205_s0 + $0x18] sm:$0xff] }
   0x3   :  { %54 = vmatpush.msra.mxu0 %v24_v0  ;;  %115 = vmatpush.msra.mxu1 %v24_v0  ;;  %v17_v6 = vld [vmem:[%s205_s0] sm:$0xff]  ;;  %v18_v7 = vld [vmem:[%s205_s0 + $0x8] sm:$0xff] }
   0x4   :  { %119 = vmatpush.msra.mxu2 %v23_v1  ;;  %120 = vmatpush.msra.mxu3 %v23_v1  ;;  %v127_v8 = vld [vmem:[%s204_s2] ss:$0 sm:$0xff] }
   0x5   :  { %55 = vmatpush.msra.mxu0 %v23_v1  ;;  %118 = vmatpush.msra.mxu1 %v23_v1 }
   0x6   :  { %122 = vmatpush.msra.mxu2 %v22_v2  ;;  %123 = vmatpush.msra.mxu3 %v22_v2 }
   0x7   :  { %56 = vmatpush.msra.mxu0 %v22_v2  ;;  %121 = vmatpush.msra.mxu1 %v22_v2 }
   0x8   :  { %125 = vmatpush.msra.mxu2 %v21_v3  ;;  %126 = vmatpush.msra.mxu3 %v21_v3 }
   0x9   :  { %113 = vmatmul.msk.f32.vlgmr.msra.gmra.mxu2 %vm29_vm0, %v19_v4  ;;  %114 = vmatmul.msk.f32.vlgmr.msra.gmra.mxu3 %vm29_vm0, %v20_v5 }
   0xa   :  { %57 = vmatpush.msra.mxu0 %v21_v3  ;;  %124 = vmatpush.msra.mxu1 %v21_v3 }
   0xb   :  { %111 = vmatmul.msk.f32.vlgmr.msra.gmra.mxu0 %vm29_vm0, %v17_v6  ;;  %112 = vmatmul.msk.f32.vlgmr.msra.gmra.mxu1 %vm29_vm0, %v18_v7 }
  0x88   :  { %v59_v9 = vpop.f32.mrf.mxu0  ;;  %v62_v10 = vpop.f32.mrf.mxu1 }
  0x89   :  { %v60_v11 = vadd.f32 %v127_v8, %v59_v9  ;;  %v63_v12 = vadd.f32 %v127_v8, %v62_v10 }
  0x8b   :  { %71 = vst [vmem:[%s206_s3] sm:$0xff] %v60_v11  ;;  %v85_v13 = vmul.f32 %v60_v11, %v60_v11  ;;  %v75_v14 = vadd.f32 %v63_v12, %v60_v11  ;;  %v86_v15 = vmul.f32 %v63_v12, %v63_v12 }
  0x8c   :  { %72 = vst [vmem:[%s206_s3 + $0x8] sm:$0xff] %v63_v12  ;;  %v65_v16 = vpop.f32.mrf.mxu2  ;;  %v68_v17 = vpop.f32.mrf.mxu3 }
  0x8d   :  { %v89_v18 = vadd.f32 %v86_v15, %v85_v13  ;;  %v66_v19 = vadd.f32 %v127_v8, %v65_v16  ;;  %v69_v20 = vadd.f32 %v127_v8, %v68_v17 }
  0x8f   :  { %73 = vst [vmem:[%s206_s3 + $0x10] sm:$0xff] %v66_v19  ;;  %v76_v21 = vadd.f32 %v75_v14, %v66_v19  ;;  %v87_v22 = vmul.f32 %v66_v19, %v66_v19  ;;  %v88_v23 = vmul.f32 %v69_v20, %v69_v20 }
  0x90   :  { %74 = vst [vmem:[%s206_s3 + $0x18] sm:$0xff] %v69_v20 }
  0x91   :  { %v90_v24 = vadd.f32 %v89_v18, %v87_v22  ;;  %v77_v25 = vadd.f32 %v76_v21, %v69_v20 }
  0x93   :  { %v78_v26 = vrot.slane %v77_v25, 4  ;;  %v91_v27 = vadd.f32 %v90_v24, %v88_v23 }
  0x95   :  { %v79_v28 = vadd.f32 %v78_v26, %v77_v25  ;;  %v92_v29 = vrot.slane %v91_v27, 4 }
  0x97   :  { %v80_v30 = vrot.slane %v79_v28, 2  ;;  %v93_v31 = vadd.f32 %v92_v29, %v91_v27 }
  0x99   :  { %v81_v32 = vadd.f32 %v80_v30, %v79_v28  ;;  %v94_v33 = vrot.slane %v93_v31, 2 }
  0x9b   :  { %v82_v34 = vrot.slane %v81_v32, 1  ;;  %v95_v35 = vadd.f32 %v94_v33, %v93_v31 }
  0x9d   :  { %v83_v36 = vadd.f32 %v82_v34, %v81_v32  ;;  %v96_v37 = vrot.slane %v95_v35, 1 }
  0x9f   :  { %84 = vst [vmem:[%s207_s4] sm:$0x1] %v83_v36  ;;  %v97_v38 = vadd.f32 %v96_v37, %v95_v35 }
  0xa1   :  { %98 = vst [vmem:[%s208_s5] sm:$0x1] %v97_v38 }

</bundles_post_ra>
